<compile_context>
chip_gen: v5e
topology: v5e:2x2
jax: 0.10.0
libtpu: 0.0.40
codegen_flags: <defaults>
</compile_context>

<pallas_src>
import math
import functools

import jax
import jax.numpy as jnp
from jax import lax
from jax.experimental import pallas as pl
from jax.experimental.pallas import tpu as pltpu


def _round_up(x, mult):
    return ((x + mult - 1) // mult) * mult


def _geglu_kernel(x_ref, w_ref, b_ref, o_ref, acc_ref, *, tn):
    """One (n, m, k) grid step:
         acc += x_tile @ [Wx_n | Wg_n]              (MXU, f32 accumulate)
         at k == K-1:  a, g = split(acc + b); out = a * gelu_exact(g)
    """
    k = pl.program_id(2)

    @pl.when(k == 0)
    def _init():
        acc_ref[...] = jnp.zeros_like(acc_ref)

    acc_ref[...] += jnp.dot(
        x_ref[...], w_ref[...], preferred_element_type=jnp.float32
    )

    @pl.when(k == pl.num_programs(2) - 1)
    def _finalize():
        acc = acc_ref[...] + b_ref[...].astype(jnp.float32)
        a = acc[:, :tn]
        g = acc[:, tn:]
        # PyTorch F.gelu default = exact (erf) GELU; epilogue kept in f32.
        gelu_g = 0.5 * g * (1.0 + lax.erf(g * (1.0 / math.sqrt(2.0))))
        o_ref[...] = (a * gelu_g).astype(o_ref.dtype)


def prepare_geglu_params(weight, bias, *, tn_max=256, tk_max=512):
    """One-time packing of PyTorch nn.Linear(dim_in, 2*dim_out) params.

    weight: (2*dim_out, dim_in)   bias: (2*dim_out,)
    Returns (w_packed, b_packed, meta) where w_packed is (dim_in_p, 2*dim_out_p)
    with columns interleaved per N tile as [Wx_tile_n | Wg_tile_n], b_packed is
    (1, 2*dim_out_p), and meta holds the static tiling constants.
    Call ONCE per set of weights and reuse (hoists the transpose/copy out of the
    per-forward path).
    """
    dim_out2, dim_in = weight.shape
    dim_out = dim_out2 // 2

    tn = dim_out if dim_out <= tn_max else tn_max
    tk = dim_in if dim_in <= tk_max else tk_max
    dim_out_p = _round_up(dim_out, tn)
    dim_in_p = _round_up(dim_in, tk)

    w_t = weight.T                                 # (dim_in, 2*dim_out)
    wx = w_t[:, :dim_out]
    wg = w_t[:, dim_out:]
    bx = bias[:dim_out]
    bg = bias[dim_out:]

    if dim_out_p != dim_out:                       # pad output features (inert)
        pad = dim_out_p - dim_out
        wx = jnp.pad(wx, ((0, 0), (0, pad)))
        wg = jnp.pad(wg, ((0, 0), (0, pad)))
        bx = jnp.pad(bx, ((0, pad),))
        bg = jnp.pad(bg, ((0, pad),))
    if dim_in_p != dim_in:                         # pad reduction dim (inert)
        padk = dim_in_p - dim_in
        wx = jnp.pad(wx, ((0, padk), (0, 0)))
        wg = jnp.pad(wg, ((0, padk), (0, 0)))

    n_tiles = dim_out_p // tn
    w_packed = jnp.concatenate(
        [wx.reshape(dim_in_p, n_tiles, 1, tn),
         wg.reshape(dim_in_p, n_tiles, 1, tn)],
        axis=2,
    ).reshape(dim_in_p, 2 * dim_out_p)
    b_packed = jnp.concatenate(
        [bx.reshape(n_tiles, 1, tn), bg.reshape(n_tiles, 1, tn)], axis=1
    ).reshape(1, 2 * dim_out_p)

    meta = {"dim_out": dim_out, "tn": tn, "tk": tk}
    return w_packed, b_packed, meta


@functools.partial(jax.jit, static_argnames=("dim_out", "tn", "tk", "tm_max"))
def geglu_forward_packed(x, w_packed, b_packed, *, dim_out, tn, tk, tm_max=256):
    """x: (..., dim_in); w_packed/b_packed from prepare_geglu_params."""
    dim_in = x.shape[-1]
    dim_in_p = w_packed.shape[0]
    dim_out_p = w_packed.shape[1] // 2

    lead_shape = x.shape[:-1]
    m = math.prod(lead_shape) if lead_shape else 1
    x2d = x.reshape(m, dim_in)

    # M tile: single rounded-up tile for small token counts, else tm_max tiles.
    tm = _round_up(m, 8) if m <= tm_max else tm_max
    m_p = _round_up(m, tm)

    if m_p != m or dim_in_p != dim_in:
        x2d = jnp.pad(x2d, ((0, m_p - m), (0, dim_in_p - dim_in)))

    n_tiles = dim_out_p // tn
    m_tiles = m_p // tm
    k_tiles = dim_in_p // tk

    kernel = functools.partial(_geglu_kernel, tn=tn)

    out2d = pl.pallas_call(
        kernel,
        out_shape=jax.ShapeDtypeStruct((m_p, dim_out_p), x.dtype),
        grid_spec=pltpu.PrefetchScalarGridSpec(
            num_scalar_prefetch=0,
            # N outermost: weight block index depends only on (n, k), so with
            # k_tiles == 1 the weight strip is not re-DMA'd as m iterates.
            grid=(n_tiles, m_tiles, k_tiles),
            in_specs=[
                pl.BlockSpec((tm, tk), lambda n, mi, k: (mi, k)),        # x tile
                pl.BlockSpec((tk, 2 * tn), lambda n, mi, k: (k, n)),     # [Wx|Wg] tile
                pl.BlockSpec((1, 2 * tn), lambda n, mi, k: (0, n)),      # [bx|bg] tile
            ],
            out_specs=pl.BlockSpec((tm, tn), lambda n, mi, k: (mi, n)),
            scratch_shapes=[pltpu.VMEM((tm, 2 * tn), jnp.float32)],      # f32 acc
        ),
        compiler_params=pltpu.CompilerParams(
            dimension_semantics=("parallel", "parallel", "arbitrary"),
        ),
    )(x2d, w_packed, b_packed)

    out2d = out2d[:m, :dim_out]
    return out2d.reshape(*lead_shape, dim_out)


def geglu_forward(x, weight, bias, *, tn_max=256, tk_max=512, tm_max=256):
    """Convenience wrapper: pack params and run (prefer prepare-once + packed call)."""
    w_packed, b_packed, meta = prepare_geglu_params(
        weight, bias, tn_max=tn_max, tk_max=tk_max
    )
    return geglu_forward_packed(
        x, w_packed, b_packed,
        dim_out=meta["dim_out"], tn=meta["tn"], tk=meta["tk"], tm_max=tm_max,
    )


def geglu_reference(x, weight, bias):
    proj = jnp.einsum("...i,oi->...o", x, weight) + bias
    a, g = jnp.split(proj, 2, axis=-1)
    return a * jax.nn.gelu(g, approximate=False)


def _make_params(key, dim_in, dim_out, dtype=jnp.float32):
    kw, kb = jax.random.split(key)
    bound = 1.0 / math.sqrt(dim_in)
    weight = jax.random.uniform(
        kw, (dim_out * 2, dim_in), minval=-bound, maxval=bound, dtype=dtype
    )
    bias = jax.random.uniform(
        kb, (dim_out * 2,), minval=-bound, maxval=bound, dtype=dtype
    )
    return weight, bias


if __name__ == "__main__":
    key = jax.random.PRNGKey(0)
    k1, k2, k3, k4 = jax.random.split(key, 4)

    # --- Small case matching the module spec: batch=2, seq=8, dim_in=32, dim_out=32.
    batch, seq, dim_in, dim_out = 2, 8, 32, 32
    x = jax.random.normal(k1, (batch, seq, dim_in), dtype=jnp.float32)
    weight, bias = _make_params(k2, dim_in, dim_out)

    # Prepare-once pattern (weights packed outside the per-call path).
    w_packed, b_packed, meta = prepare_geglu_params(weight, bias)
    out = geglu_forward_packed(
        x, w_packed, b_packed,
        dim_out=meta["dim_out"], tn=meta["tn"], tk=meta["tk"],
    )
    out = jax.block_until_ready(out)
    ref = geglu_reference(x, weight, bias)
    assert out.shape == (batch, seq, dim_out)
    assert jnp.allclose(out, ref, atol=1e-5, rtol=1e-5), "mismatch vs reference (small)"

    # --- Padded / multi-tile case: exercises M padding, N tiling (dim_out > tn),
    #     and K accumulation (dim_in > tk).
    batch2, seq2, dim_in2, dim_out2 = 2, 9, 640, 320
    x2 = jax.random.normal(k3, (batch2, seq2, dim_in2), dtype=jnp.float32)
    weight2, bias2 = _make_params(k4, dim_in2, dim_out2)
    w2_packed, b2_packed, meta2 = prepare_geglu_params(weight2, bias2)
    out2 = geglu_forward_packed(
        x2, w2_packed, b2_packed,
        dim_out=meta2["dim_out"], tn=meta2["tn"], tk=meta2["tk"],
    )
    out2 = jax.block_until_ready(out2)
    ref2 = geglu_reference(x2, weight2, bias2)
    assert out2.shape == (batch2, seq2, dim_out2)
    assert jnp.allclose(out2, ref2, atol=2e-3, rtol=2e-3), "mismatch vs reference (tiled)"

    print("KERNEL_OK")
</pallas_src>

<mosaic_0001>
module attributes {stable_mosaic.version = 11 : i64} {
  func.func @_geglu_kernel(%arg0: i32, %arg1: i32, %arg2: i32, %arg3: memref<16x32xf32, #tpu.memory_space<vmem>>, %arg4: memref<32x64xf32, #tpu.memory_space<vmem>>, %arg5: memref<1x64xf32, #tpu.memory_space<vmem>>, %arg6: memref<16x32xf32, #tpu.memory_space<vmem>>, %arg7: memref<16x64xf32, #tpu.memory_space<vmem>>) attributes {dimension_semantics = [#tpu.dimension_semantics<parallel>, #tpu.dimension_semantics<parallel>, #tpu.dimension_semantics<arbitrary>], iteration_bounds = array<i64: 1, 1, 1>, scalar_prefetch = 0 : i64, scratch_operands = 1 : i64, tpu.core_type = #tpu.core_type<tc>, window_params = [{transform_indices = @transform_0, window_bounds = array<i64: 16, 32>}, {transform_indices = @transform_1, window_bounds = array<i64: 32, 64>}, {transform_indices = @transform_2, window_bounds = array<i64: 1, 64>}, {transform_indices = @transform_3, window_bounds = array<i64: 16, 32>}]} {
    %c0_i32 = arith.constant 0 : i32
    %0 = arith.cmpi eq, %arg2, %c0_i32 : i32
    %1 = arith.extui %0 : i1 to i32
    %c0_i32_0 = arith.constant 0 : i32
    %2 = arith.cmpi ne, %1, %c0_i32_0 : i32
    scf.if %2 {
      %cst_10 = arith.constant 0.000000e+00 : f32
      %12 = vector.broadcast %cst_10 : f32 to vector<16x64xf32>
      %c0_11 = arith.constant 0 : index
      %c0_12 = arith.constant 0 : index
      %13 = vector.load %arg7[%c0_11, %c0_12] : memref<16x64xf32, #tpu.memory_space<vmem>>, vector<16x64xf32>
      tpu.vector_store %arg7[%c0_11, %c0_12], %12 {strides = array<i32>} : memref<16x64xf32, #tpu.memory_space<vmem>>, vector<16x64xf32>,
    } else {
    }
    %c0 = arith.constant 0 : index
    %c0_1 = arith.constant 0 : index
    %3 = vector.load %arg7[%c0, %c0_1] : memref<16x64xf32, #tpu.memory_space<vmem>>, vector<16x64xf32>
    %c0_2 = arith.constant 0 : index
    %c0_3 = arith.constant 0 : index
    %4 = vector.load %arg3[%c0_2, %c0_3] : memref<16x32xf32, #tpu.memory_space<vmem>>, vector<16x32xf32>
    %c0_4 = arith.constant 0 : index
    %c0_5 = arith.constant 0 : index
    %5 = vector.load %arg4[%c0_4, %c0_5] : memref<32x64xf32, #tpu.memory_space<vmem>>, vector<32x64xf32>
    %cst = arith.constant dense<0.000000e+00> : vector<16x64xf32>
    %6 = tpu.matmul %4, %5, %cst {dimension_numbers = #tpu.dot_dimension_numbers<[1], [0], [0], [1], [0, 0, 1, 1], [], []>} : vector<16x32xf32>, vector<32x64xf32>, vector<16x64xf32> -> vector<16x64xf32>
    %7 = arith.addf %3, %6 : vector<16x64xf32>
    %c0_6 = arith.constant 0 : index
    %c0_7 = arith.constant 0 : index
    %8 = vector.load %arg7[%c0_6, %c0_7] : memref<16x64xf32, #tpu.memory_space<vmem>>, vector<16x64xf32>
    tpu.vector_store %arg7[%c0_6, %c0_7], %7 {strides = array<i32>} : memref<16x64xf32, #tpu.memory_space<vmem>>, vector<16x64xf32>,
    %c0_i32_8 = arith.constant 0 : i32
    %9 = arith.cmpi eq, %arg2, %c0_i32_8 : i32
    %10 = arith.extui %9 : i1 to i32
    %c0_i32_9 = arith.constant 0 : i32
    %11 = arith.cmpi ne, %10, %c0_i32_9 : i32
    scf.if %11 {
      %c0_10 = arith.constant 0 : index
      %c0_11 = arith.constant 0 : index
      %12 = vector.load %arg7[%c0_10, %c0_11] : memref<16x64xf32, #tpu.memory_space<vmem>>, vector<16x64xf32>
      %c0_12 = arith.constant 0 : index
      %c0_13 = arith.constant 0 : index
      %13 = vector.load %arg5[%c0_12, %c0_13] : memref<1x64xf32, #tpu.memory_space<vmem>>, vector<1x64xf32>
      %14 = vector.broadcast %13 : vector<1x64xf32> to vector<16x64xf32>
      %15 = arith.addf %12, %14 : vector<16x64xf32>
      %16 = vector.extract_strided_slice %15 {offsets = [0, 0], sizes = [16, 32], strides = [1, 1]} : vector<16x64xf32> to vector<16x32xf32>
      %17 = vector.extract_strided_slice %15 {offsets = [0, 32], sizes = [16, 32], strides = [1, 1]} : vector<16x64xf32> to vector<16x32xf32>
      %cst_14 = arith.constant 5.000000e-01 : f32
      %18 = vector.broadcast %cst_14 : f32 to vector<16x32xf32>
      %19 = arith.mulf %18, %17 : vector<16x32xf32>
      %cst_15 = arith.constant 0.707106769 : f32
      %20 = vector.broadcast %cst_15 : f32 to vector<16x32xf32>
      %21 = arith.mulf %17, %20 : vector<16x32xf32>
      %22 = math.erf %21 : vector<16x32xf32>
      %cst_16 = arith.constant 1.000000e+00 : f32
      %23 = vector.broadcast %cst_16 : f32 to vector<16x32xf32>
      %24 = arith.addf %23, %22 : vector<16x32xf32>
      %25 = arith.mulf %19, %24 : vector<16x32xf32>
      %26 = arith.mulf %16, %25 : vector<16x32xf32>
      %c0_17 = arith.constant 0 : index
      %c0_18 = arith.constant 0 : index
      %27 = vector.load %arg6[%c0_17, %c0_18] : memref<16x32xf32, #tpu.memory_space<vmem>>, vector<16x32xf32>
      tpu.vector_store %arg6[%c0_17, %c0_18], %26 {strides = array<i32>} : memref<16x32xf32, #tpu.memory_space<vmem>>, vector<16x32xf32>,
    } else {
    }
    return
  }
  func.func @transform_0(%arg0: i32, %arg1: i32, %arg2: i32) -> (i32, i32) {
    %c0_i32 = arith.constant 0 : i32
    return %arg1, %arg2 : i32, i32
  }
  func.func @transform_1(%arg0: i32, %arg1: i32, %arg2: i32) -> (i32, i32) {
    %c0_i32 = arith.constant 0 : i32
    return %arg2, %arg0 : i32, i32
  }
  func.func @transform_2(%arg0: i32, %arg1: i32, %arg2: i32) -> (i32, i32) {
    %c0_i32 = arith.constant 0 : i32
    %c0_i32_0 = arith.constant 0 : i32
    return %c0_i32, %arg0 : i32, i32
  }
  func.func @transform_3(%arg0: i32, %arg1: i32, %arg2: i32) -> (i32, i32) {
    %c0_i32 = arith.constant 0 : i32
    return %arg1, %arg0 : i32, i32
  }
}

</mosaic_0001>

<bundles_post_ra>
// kernel: geglu_forward_packed.1
= control target key start
LH: loop header
LB: loop body
LE: loop exit
PB: predicated region body
PF: predicated region fallthrough
CT: control target
= control target key end

     0   :  { %8 = vsyncpa [#allocation4], 0  ;;  %s402_s0 = inlined_call_operand.hbm [shape: f32[16,32], index: 0, kind: input, shape index: {}]   ;;  %s403_s1 = inlined_call_operand.hbm [shape: f32[32,64], index: 1, kind: input, shape index: {}]   ;;  %s404_s2 = inlined_call_operand.vmem [shape: f32[1,64], index: 2, kind: input, shape index: {}]   ;;  %s405_s3 = inlined_call_operand.hbm [shape: f32[16,32], index: 3, kind: output, shape index: {}]  }
   0x1   :  { %9 = vsyncpa [#allocation7], 0 }
   0x2   :  { %10 = vsyncpa [#allocation5], 0  ;;  %s15_s14 = sshll.u32 %s402_s0, 4  ;;  %s326_s15 = smov [#allocation3]   ;;  %s16_s14 = int_to_ptr.hbm [resolvable:$true] %s15_s14 }
   0x3   :  { %s17_s16 = sshll.u32 %s326_s15, 4  ;;  %s28_s19 = sshll.u32 %s403_s1, 4  ;;  %s18_s16 = int_to_ptr.vmem [resolvable:$true] %s17_s16  ;;  %s29_s19 = int_to_ptr.hbm [resolvable:$true] %s28_s19 }
   0x4   :  { %s327_s20 = smov 128   ;;  %s328_s21 = smov 8  }
   0x5   :  { %23 = dma.hbm_to_vmem [thread:$0]  %s16_s14, 256, %s18_s16, [#allocation4], %s327_s20, %s327_s20, %s328_s21  }
   0x6   :  { %s329_s22 = smov [#allocation6]  }
   0x7   :  { %s30_s23 = sshll.u32 %s329_s22, 4  ;;  %s31_s23 = int_to_ptr.vmem [resolvable:$true] %s30_s23 }
   0x8   :  { %36 = dma.hbm_to_vmem [thread:$0]  %s29_s19, 512, %s31_s23, [#allocation7], %s327_s20, %s327_s20, %s328_s21  }
   0x9   :  { %320 = dma.done.wait [#allocation4], 256  }
   0xa   :  { %321 = vsyncadd [#allocation4], 4294967040 }
   0xb   :  { %322 = dma.done.wait [#allocation7], 512  }
   0xc   :  { %323 = vsyncadd [#allocation7], 4294966784  ;;  %vm51_vm0 = vcmask 523264   ;;  %v330_v0 = vmov 0.0   ;;  %v61_v1 = vld [vmem:[#allocation6 + $0x18] sm:$0xff]  ;;  %v60_v2 = vld [vmem:[#allocation6 + $0x10] sm:$0xff] }
   0xd   :  { %52 = vst.msk [vmem:[#allocation2] sm:$0xff] %vm51_vm0, %v330_v0  ;;  %81 = vmatpush.msra.mxu0 %v61_v1  ;;  %232 = vmatpush.msra.mxu1 %v61_v1  ;;  %v59_v3 = vld [vmem:[#allocation6 + $0x8] sm:$0xff]  ;;  %v58_v4 = vld [vmem:[#allocation6] sm:$0xff]  ;;  %v56_v5 = vld [vmem:[#allocation3] sm:$0xff]  ;;  %vm62_vm1 = vcmask 261120   ;;  %s332_s24 = smov [#allocation8]  }
   0xe   :  { %53 = vst.msk [vmem:[#allocation2 + $0x8] sm:$0xff] %vm51_vm0, %v330_v0  ;;  %v57_v6 = vld [vmem:[#allocation3 + $0x8] sm:$0xff]  ;;  %v243_v13 = vld [vmem:[%s404_s2] ss:$0 sm:$0xff]  ;;  %s331_s2 = smov 96   ;;  %s212_s25 = sshll.u32 %s332_s24, 4  ;;  %s213_s25 = int_to_ptr.vmem [resolvable:$true] %s212_s25 }
   0xf   :  { %82 = vmatpush.msra.mxu0 %v60_v2  ;;  %233 = vmatpush.msra.mxu1 %v60_v2  ;;  %s214_s28 = sshll.u32 %s405_s3, 4  ;;  %s215_s28 = int_to_ptr.hbm [resolvable:$true] %s214_s28 }
  0x11   :  { %83 = vmatpush.msra.mxu0 %v59_v3  ;;  %234 = vmatpush.msra.mxu1 %v59_v3 }
  0x13   :  { %84 = vmatpush.msra.mxu0 %v58_v4  ;;  %235 = vmatpush.msra.mxu1 %v58_v4 }
  0x14   :  { %228 = vmatmul.msk.f32.vlgmr.msra.gmra.mxu0 %vm62_vm1, %v56_v5  ;;  %229 = vmatmul.msk.f32.vlgmr.msra.gmra.mxu1 %vm62_vm1, %v57_v6  ;;  %v54_v7 = vld [vmem:[#allocation2] sm:$0xff] }
  0x15   :  { %v55_v8 = vld [vmem:[#allocation2 + $0x8] sm:$0xff] }
  0x91   :  { %v86_v9 = vpop.f32.mrf.mxu0  ;;  %v89_v10 = vpop.f32.mrf.mxu1 }
  0x92   :  { %v92_v11 = vadd.f32 %v86_v9, %v54_v7  ;;  %v93_v12 = vadd.f32 %v89_v10, %v55_v8 }
  0x94   :  { %95 = vst.msk [vmem:[#allocation2] sm:$0xff] %vm51_vm0, %v92_v11 }
  0x95   :  { %96 = vst.msk [vmem:[#allocation2 + $0x8] sm:$0xff] %vm51_vm0, %v93_v12 }
  0x9b   :  { %v100_v14 = vld [vmem:[#allocation2] sm:$0xff] }
  0x9c   :  { %v374_v15 = vadd.f32 %v243_v13, %v100_v14  ;;  %v101_v16 = vld [vmem:[#allocation2 + $0x8] sm:$0xff] }
  0x9d   :  { %v376_v17 = vadd.f32 %v243_v13, %v101_v16 }
  0x9e   :  { %v379_v18 = vmul.f32 0.70710677, %v374_v15 }
  0x9f   :  { %v382_v19 = vmul.f32 0.70710677, %v376_v17 }
  0xa0   :  { %v112_v20 = vmul.f32 %v379_v18, %v379_v18 }
  0xa1   :  { %v152_v21 = vmul.f32 %v382_v19, %v382_v19 }
  0xa2   :  { %v113_v22 = vmin.f32 %v112_v20, 16.0 }
  0xa3   :  { %v153_v23 = vmin.f32 %v152_v21, 16.0 }
  0xa4   :  { %v114_v24 = vmul.f32 2.1237322e-06, %v113_v22  ;;  %v125_v25 = vmul.f32 3.8918573e-05, %v113_v22 }
  0xa5   :  { %v154_v26 = vmul.f32 2.1237322e-06, %v153_v23  ;;  %v165_v27 = vmul.f32 3.8918573e-05, %v153_v23 }
  0xa6   :  { %v115_v28 = vadd.f32 0.00028619796, %v114_v24  ;;  %v126_v29 = vadd.f32 0.001143296, %v125_v25 }
  0xa7   :  { %v155_v30 = vadd.f32 0.00028619796, %v154_v26  ;;  %v166_v31 = vadd.f32 0.001143296, %v165_v27 }
  0xa8   :  { %v116_v32 = vmul.f32 %v115_v28, %v113_v22  ;;  %v127_v33 = vmul.f32 %v126_v29, %v113_v22  ;;  %v108_v29 = vmul.f32 0.5, %v374_v15 }
  0xa9   :  { %v156_v34 = vmul.f32 %v155_v30, %v153_v23  ;;  %v167_v35 = vmul.f32 %v166_v31, %v153_v23 }
  0xaa   :  { %v117_v36 = vadd.f32 0.0036580483, %v116_v32  ;;  %v128_v37 = vadd.f32 0.014752088, %v127_v33  ;;  %v109_v33 = vmul.f32 0.5, %v376_v17 }
  0xab   :  { %v168_v38 = vadd.f32 0.014752088, %v167_v35  ;;  %v157_v40 = vadd.f32 0.0036580483, %v156_v34 }
  0xac   :  { %v129_v39 = vmul.f32 %v128_v37, %v113_v22  ;;  %v118_v42 = vmul.f32 %v117_v36, %v113_v22 }
  0xad   :  { %v169_v41 = vmul.f32 %v168_v38, %v153_v23  ;;  %v158_v46 = vmul.f32 %v157_v40, %v153_v23 }
  0xae   :  { %v130_v43 = vadd.f32 0.112945676, %v129_v39  ;;  %v119_v48 = vadd.f32 0.05243302, %v118_v42 }
  0xaf   :  { %v170_v44 = vadd.f32 0.112945676, %v169_v41  ;;  %v159_v52 = vadd.f32 0.05243302, %v158_v46 }
  0xb0   :  { %v131_v45 = vmul.f32 %v130_v43, %v113_v22  ;;  %v120_v54 = vmul.f32 %v119_v48, %v113_v22 }
  0xb1   :  { %v171_v47 = vmul.f32 %v170_v44, %v153_v23  ;;  %v160_v57 = vmul.f32 %v159_v52, %v153_v23 }
  0xb2   :  { %v132_v49 = vadd.f32 0.4994258, %v131_v45  ;;  %v121_v58 = vadd.f32 0.18741608, %v120_v54 }
  0xb3   :  { %v172_v50 = vadd.f32 0.4994258, %v171_v47  ;;  %v161_v59 = vadd.f32 0.18741608, %v160_v57 }
  0xb4   :  { %v133_v51 = vmul.f32 %v132_v49, %v113_v22  ;;  %v122_v61 = vmul.f32 %v121_v58, %v113_v22 }
  0xb5   :  { %v173_v53 = vmul.f32 %v172_v50, %v153_v23  ;;  %v162_v2 = vmul.f32 %v161_v59, %v153_v23 }
  0xb6   :  { %v134_v55 = vadd.f32 1.0, %v133_v51  ;;  %v123_v3 = vadd.f32 1.1283791, %v122_v61 }
  0xb7   :  { %v174_v56 = vadd.f32 1.0, %v173_v53  ;;  %v163_v12 = vadd.f32 1.1283791, %v162_v2 }
  0xb8   :  { %244 = vrcp.f32 %v134_v55  ;;  %v146_v4 = vand.u32 2147483648, %v134_v55  ;;  %v144_v7 = vand.u32 2147483647, %v134_v55  ;;  %vm140_vm4 = vweird.f32 %v134_v55 }
  0xb9   :  { %246 = vrcp.f32 %v174_v56  ;;  %v186_v8 = vand.u32 2147483648, %v174_v56  ;;  %v184_v10 = vand.u32 2147483647, %v174_v56  ;;  %vm180_vm6 = vweird.f32 %v174_v56 }
  0xba   :  { %v147_v13 = vor.u32 1.1754944e-38, %v146_v4  ;;  %v124_v16 = vmul.f32 %v123_v3, %v379_v18  ;;  %vm145_vm7 = vcmp.eq.f32.partialorder %v144_v7, 8.507059e+37  ;;  %v164_v25 = vmul.f32 %v163_v12, %v382_v19 }
  0xbb   :  { %v187_v21 = vor.u32 1.1754944e-38, %v186_v8  ;;  %vm185_vm9 = vcmp.eq.f32.partialorder %v184_v10, 8.507059e+37 }
  0xbe   :  { %v245_v60 = vpop.eup %244 }
  0xbf   :  { %v247_v62 = vpop.eup %246  ;;  %v136_v63 = vmul.f32 %v245_v60, %v134_v55  ;;  %vm141_vm2 = vweird.f32 %v245_v60 }
  0xc0   :  { %v176_v0 = vmul.f32 %v247_v62, %v174_v56  ;;  %vm181_vm3 = vweird.f32 %v247_v62  ;;  %vm142_vm5 = vmor %vm140_vm4, %vm141_vm2 }
  0xc1   :  { %v137_v1 = vsub.f32 1.0, %v136_v63  ;;  %vm182_vm8 = vmor %vm180_vm6, %vm181_vm3 }
  0xc2   :  { %v177_v5 = vsub.f32 1.0, %v176_v0 }
  0xc3   :  { %v138_v6 = vmul.f32 %v245_v60, %v137_v1 }
  0xc4   :  { %v178_v9 = vmul.f32 %v247_v62, %v177_v5 }
  0xc5   :  { %v139_v11 = vadd.f32 %v245_v60, %v138_v6 }
  0xc6   :  { %v179_v14 = vadd.f32 %v247_v62, %v178_v9 }
  0xc7   :  { %v143_v20 = vsel %vm142_vm5, %v245_v60, %v139_v11 }
  0xc8   :  { %v148_v22 = vsel %vm145_vm7, %v147_v13, %v143_v20  ;;  %v183_v23 = vsel %vm182_vm8, %v247_v62, %v179_v14 }
  0xc9   :  { %v149_v24 = vmul.f32 %v148_v22, %v124_v16  ;;  %v188_v26 = vsel %vm185_vm9, %v187_v21, %v183_v23 }
  0xca   :  { %v189_v28 = vmul.f32 %v188_v26, %v164_v25 }
  0xcb   :  { %v230_v27 = vclamps-f32 %v149_v24, 1.0 }
  0xcc   :  { %v231_v32 = vclamps-f32 %v189_v28, 1.0 }
  0xcd   :  { %v192_v30 = vadd.f32 1.0, %v230_v27 }
  0xce   :  { %v193_v18 = vadd.f32 1.0, %v231_v32 }
  0xcf   :  { %v194_v31 = vmul.f32 %v192_v30, %v108_v29 }
  0xd0   :  { %v195_v34 = vmul.f32 %v193_v18, %v109_v33 }
  0xd1   :  { %198 = vrot.lane.b32.xlu0 %v194_v31, %s331_s2 }
  0xd9   :  { %200 = vrot.lane.b32.xlu0 %v195_v34, %s331_s2 }
 0x143   :  { %v199_v35 = vpop.permute.xlu0 %198 }
 0x144   :  { %v204_v36 = vmul.f32 %v199_v35, %v374_v15 }
 0x146   :  { %206 = vst.msk [vmem:[#allocation8] sm:$0xff] %vm62_vm1, %v204_v36 }
 0x14b   :  { %v201_v19 = vpop.permute.xlu0 %200 }
 0x14c   :  { %v205_v37 = vmul.f32 %v201_v19, %v376_v17 }
 0x14e   :  { %207 = vst.msk [vmem:[#allocation8 + $0x8] sm:$0xff] %vm62_vm1, %v205_v37 }
 0x14f   :  { %220 = dma.vmem_to_hbm [thread:$0]  %s213_s25, 256, %s215_s28, [#allocation5], %s327_s20, %s327_s20, %s328_s21  }
 0x150   :  { %324 = dma.done.wait [#allocation5], 256  }
 0x151   :  { %325 = vsyncadd [#allocation5], 4294967040 }
 0x152   :  { %225 = vsyncpa [#allocation4], 1 }
 0x153   :  { %226 = vsyncpa [#allocation7], 1 }
 0x154   :  { %227 = vsyncpa [#allocation5], 1 }

</bundles_post_ra>
